<compile_context>
chip_gen: v7x
topology: tpu7x:2x2x1
jax: 0.10.0
libtpu: 0.0.40
codegen_flags: <defaults>
</compile_context>

<pallas_src>
import math

import jax
import jax.numpy as jnp
from jax.experimental import pallas as pl
from jax.experimental.pallas import tpu as pltpu

# Demo hyper-parameters only; the wrapper/kernel derive everything from shapes.
BATCH = 2
NUM_NODES = 16
INPUT_DIM = 4
OUTPUT_DIM = 8
MAX_DIFF_STEP = 2
NUM_SUPPORTS = 2


def _make_kernel(S, K, N):
    """Build a kernel specialized to static (S, K, N) derived from the inputs."""

    def kernel(x_ref, a_ref, w_ref, b_ref, out_ref):
        # x_ref:   (N, B*D)              x0, col = b*D + d
        # a_ref:   (S*N, S*N)            block-diagonal dense supports
        # w_ref:   (S*(K+1)*B*D, B*O)    weight expanded block-diagonally over batch
        # b_ref:   (1, B*O)              bias tiled over batch
        # out_ref: (N, B*O)              lane-dense output slab, col = b*O + o
        a = a_ref[...]
        # Replicate x0 across supports in VMEM (sublane concat; avoids S HBM copies).
        x = jnp.concatenate([x_ref[...]] * S, axis=0)          # (S*N, B*D)

        # Diffusion chain: one fused matmul per step handles all supports at once.
        # TODO(synk): torch.sparse.mm has no Pallas/TPU sparse primitive; the
        # supports are applied as dense matmuls (identical values).
        pieces = [x]
        for _ in range(K):
            x = jnp.dot(a, x, preferred_element_type=jnp.float32)
            pieces.append(x)

        # Diffusion slab (N, S*(K+1)*B*D): column index (s*(K+1)+k)*B*D + b*D + d.
        # Per-support row blocks are sliced at sublane-aligned offsets (multiples of N).
        slab = jnp.concatenate(
            [pieces[k][s * N:(s + 1) * N, :] for s in range(S) for k in range(K + 1)],
            axis=1,
        )

        # Single projection matmul (f32 accumulation inside the MXU) + single
        # lane-dense store with the bias added once.
        out_ref[...] = (
            jnp.dot(slab, w_ref[...], preferred_element_type=jnp.float32) + b_ref[...]
        )

    return kernel


@jax.jit
def diffusion_convolution(inputs, supports, weight, bias):
    """inputs: (B, N, D); supports: (S, N, N) dense; weight: (S*(K+1)*D, O); bias: (O,)."""
    B, N, D = inputs.shape
    S = supports.shape[0]
    O = weight.shape[-1]
    K = weight.shape[0] // (D * S) - 1
    assert weight.shape[0] == D * (K + 1) * S, "weight rows inconsistent with shapes"

    f32 = jnp.float32
    # ---- layout prep (plain JAX glue; in DCRNN the A / W expansions are
    # time-step-invariant parameters and would be hoisted out of the RNN loop) ----
    # x0[n, b*D + d] = inputs[b, n, d].  The column permutation vs. torch's d*B + b
    # layout is harmless for A @ x (acts on rows) and is matched exactly by the
    # expanded weight below.
    x0 = jnp.transpose(inputs, (1, 0, 2)).reshape(N, B * D).astype(f32)
    a_bd = jnp.einsum("sij,st->sitj", supports.astype(f32),
                      jnp.eye(S, dtype=f32)).reshape(S * N, S * N)     # block-diag supports
    w_r = weight.astype(f32).reshape(S * (K + 1), D, O)
    # w_big[(c, b, d), (b', o)] = delta(b, b') * weight[c*D + d, o],  c = s*(K+1)+k
    w_big = jnp.einsum("cdo,bp->cbdpo", w_r,
                       jnp.eye(B, dtype=f32)).reshape(S * (K + 1) * B * D, B * O)
    bias_flat = jnp.tile(bias.astype(f32).reshape(1, O), (1, B))       # (1, B*O)

    out_flat = pl.pallas_call(
        _make_kernel(S, K, N),
        out_shape=jax.ShapeDtypeStruct((N, B * O), f32),
        grid=(1,),
        in_specs=[
            pl.BlockSpec((N, B * D), lambda i: (0, 0)),
            pl.BlockSpec((S * N, S * N), lambda i: (0, 0)),
            pl.BlockSpec((S * (K + 1) * B * D, B * O), lambda i: (0, 0)),
            pl.BlockSpec((1, B * O), lambda i: (0, 0)),
        ],
        out_specs=pl.BlockSpec((N, B * O), lambda i: (0, 0)),
        compiler_params=pltpu.CompilerParams(dimension_semantics=("arbitrary",)),
        # TODO(synk): at these shapes the call is launch-bound (~4 KiB I/O); in DCRNN
        # this layer runs once per RNN time-step, and the right amortization is to
        # lift that time/sequence axis into a 'parallel' grid axis (and tile A rows
        # if N grows, to respect v7x/v5e scoped-VMEM limits).
    )(x0, a_bd, w_big, bias_flat)

    # (N, B*O) -> (B, N, O): free layout plumbing in the wrapper.
    return out_flat.reshape(N, B, O).transpose(1, 0, 2)


def reference(inputs, supports, weight, bias):
    """Pure-JAX transliteration of the PyTorch forward (for verification)."""
    B, N, D = inputs.shape
    S = supports.shape[0]
    K = weight.shape[0] // (D * S) - 1
    x0 = jnp.transpose(inputs, (1, 2, 0)).reshape(N, D * B)   # torch col layout d*B + b
    outs = []
    for s in range(S):
        x1 = x0
        outs.append(x1)
        for _ in range(K):
            x1 = supports[s] @ x1
            outs.append(x1)
    diff = jnp.concatenate(outs, axis=1)                       # (N, S*(K+1)*D*B)
    diff = diff.reshape(N, D * (K + 1) * S, B)
    diff = jnp.transpose(diff, (2, 0, 1))                      # (B, N, S*(K+1)*D)
    return diff @ weight + bias


if __name__ == "__main__":
    key = jax.random.PRNGKey(0)
    k_in, k_sup, k_w = jax.random.split(key, 3)

    inputs = jax.random.normal(k_in, (BATCH, NUM_NODES, INPUT_DIM), jnp.float32)

    # Deterministic dense "supports" (row-normalized random-walk matrices).
    adj = jax.random.uniform(k_sup, (NUM_SUPPORTS, NUM_NODES, NUM_NODES), jnp.float32)
    supports = adj / jnp.sum(adj, axis=-1, keepdims=True)

    # Parameters: xavier_uniform weight, zero bias (matches reset_parameters).
    fan_in = INPUT_DIM * (MAX_DIFF_STEP + 1) * NUM_SUPPORTS
    bound = math.sqrt(6.0 / (fan_in + OUTPUT_DIM))
    weight = jax.random.uniform(
        k_w, (fan_in, OUTPUT_DIM), jnp.float32, minval=-bound, maxval=bound)
    bias = jnp.zeros((OUTPUT_DIM,), jnp.float32)

    out = diffusion_convolution(inputs, supports, weight, bias)
    out = jax.block_until_ready(out)

    ref = reference(inputs, supports, weight, bias)
    assert out.shape == (BATCH, NUM_NODES, OUTPUT_DIM)
    assert jnp.allclose(out, ref, atol=1e-4, rtol=1e-4), "mismatch vs reference"
    print("KERNEL_OK")
</pallas_src>

<mosaic_0001>
module attributes {stable_mosaic.version = 11 : i64} {
  func.func @kernel(%arg0: i32, %arg1: memref<16x8xf32, #tpu.memory_space<vmem>>, %arg2: memref<32x32xf32, #tpu.memory_space<vmem>>, %arg3: memref<48x16xf32, #tpu.memory_space<vmem>>, %arg4: memref<1x16xf32, #tpu.memory_space<vmem>>, %arg5: memref<16x16xf32, #tpu.memory_space<vmem>>) attributes {dimension_semantics = [#tpu.dimension_semantics<arbitrary>], iteration_bounds = array<i64: 1>, scalar_prefetch = 0 : i64, scratch_operands = 0 : i64, tpu.core_type = #tpu.core_type<tc>, window_params = [{pipeline_mode = #tpu.pipeline_mode<synchronous>, transform_indices = @transform_0, window_bounds = array<i64: 16, 8>}, {pipeline_mode = #tpu.pipeline_mode<synchronous>, transform_indices = @transform_1, window_bounds = array<i64: 32, 32>}, {pipeline_mode = #tpu.pipeline_mode<synchronous>, transform_indices = @transform_2, window_bounds = array<i64: 48, 16>}, {pipeline_mode = #tpu.pipeline_mode<synchronous>, transform_indices = @transform_3, window_bounds = array<i64: 1, 16>}, {pipeline_mode = #tpu.pipeline_mode<synchronous>, transform_indices = @transform_4, window_bounds = array<i64: 16, 16>}]} {
    %c0 = arith.constant 0 : index
    %c0_0 = arith.constant 0 : index
    %0 = vector.load %arg2[%c0, %c0_0] : memref<32x32xf32, #tpu.memory_space<vmem>>, vector<32x32xf32>
    %c0_1 = arith.constant 0 : index
    %c0_2 = arith.constant 0 : index
    %1 = vector.load %arg1[%c0_1, %c0_2] : memref<16x8xf32, #tpu.memory_space<vmem>>, vector<16x8xf32>
    %2 = tpu.concatenate %1, %1 in 0 : vector<16x8xf32>, vector<16x8xf32> -> vector<32x8xf32>
    %cst = arith.constant dense<0.000000e+00> : vector<32x8xf32>
    %3 = tpu.matmul %0, %2, %cst {dimension_numbers = #tpu.dot_dimension_numbers<[1], [0], [0], [1], [0, 0, 1, 1], [], []>} : vector<32x32xf32>, vector<32x8xf32>, vector<32x8xf32> -> vector<32x8xf32>
    %cst_3 = arith.constant dense<0.000000e+00> : vector<32x8xf32>
    %4 = tpu.matmul %0, %3, %cst_3 {dimension_numbers = #tpu.dot_dimension_numbers<[1], [0], [0], [1], [0, 0, 1, 1], [], []>} : vector<32x32xf32>, vector<32x8xf32>, vector<32x8xf32> -> vector<32x8xf32>
    %5 = vector.extract_strided_slice %2 {offsets = [0, 0], sizes = [16, 8], strides = [1, 1]} : vector<32x8xf32> to vector<16x8xf32>
    %6 = vector.extract_strided_slice %3 {offsets = [0, 0], sizes = [16, 8], strides = [1, 1]} : vector<32x8xf32> to vector<16x8xf32>
    %7 = vector.extract_strided_slice %4 {offsets = [0, 0], sizes = [16, 8], strides = [1, 1]} : vector<32x8xf32> to vector<16x8xf32>
    %8 = vector.extract_strided_slice %2 {offsets = [16, 0], sizes = [16, 8], strides = [1, 1]} : vector<32x8xf32> to vector<16x8xf32>
    %9 = vector.extract_strided_slice %3 {offsets = [16, 0], sizes = [16, 8], strides = [1, 1]} : vector<32x8xf32> to vector<16x8xf32>
    %10 = vector.extract_strided_slice %4 {offsets = [16, 0], sizes = [16, 8], strides = [1, 1]} : vector<32x8xf32> to vector<16x8xf32>
    %11 = tpu.concatenate %5, %6, %7, %8, %9, %10 in 1 : vector<16x8xf32>, vector<16x8xf32>, vector<16x8xf32>, vector<16x8xf32>, vector<16x8xf32>, vector<16x8xf32> -> vector<16x48xf32>
    %c0_4 = arith.constant 0 : index
    %c0_5 = arith.constant 0 : index
    %12 = vector.load %arg3[%c0_4, %c0_5] : memref<48x16xf32, #tpu.memory_space<vmem>>, vector<48x16xf32>
    %cst_6 = arith.constant dense<0.000000e+00> : vector<16x16xf32>
    %13 = tpu.matmul %11, %12, %cst_6 {dimension_numbers = #tpu.dot_dimension_numbers<[1], [0], [0], [1], [0, 0, 1, 1], [], []>} : vector<16x48xf32>, vector<48x16xf32>, vector<16x16xf32> -> vector<16x16xf32>
    %c0_7 = arith.constant 0 : index
    %c0_8 = arith.constant 0 : index
    %14 = vector.load %arg4[%c0_7, %c0_8] : memref<1x16xf32, #tpu.memory_space<vmem>>, vector<1x16xf32>
    %15 = vector.broadcast %14 : vector<1x16xf32> to vector<16x16xf32>
    %16 = arith.addf %13, %15 : vector<16x16xf32>
    %c0_9 = arith.constant 0 : index
    %c0_10 = arith.constant 0 : index
    %17 = vector.load %arg5[%c0_9, %c0_10] : memref<16x16xf32, #tpu.memory_space<vmem>>, vector<16x16xf32>
    tpu.vector_store %arg5[%c0_9, %c0_10], %16 {strides = array<i32>} : memref<16x16xf32, #tpu.memory_space<vmem>>, vector<16x16xf32>,
    return
  }
  func.func @transform_0(%arg0: i32) -> (i32, i32) {
    %c0_i32 = arith.constant 0 : i32
    %c0_i32_0 = arith.constant 0 : i32
    %c0_i32_1 = arith.constant 0 : i32
    return %c0_i32, %c0_i32_0 : i32, i32
  }
  func.func @transform_1(%arg0: i32) -> (i32, i32) {
    %c0_i32 = arith.constant 0 : i32
    %c0_i32_0 = arith.constant 0 : i32
    %c0_i32_1 = arith.constant 0 : i32
    return %c0_i32, %c0_i32_0 : i32, i32
  }
  func.func @transform_2(%arg0: i32) -> (i32, i32) {
    %c0_i32 = arith.constant 0 : i32
    %c0_i32_0 = arith.constant 0 : i32
    %c0_i32_1 = arith.constant 0 : i32
    return %c0_i32, %c0_i32_0 : i32, i32
  }
  func.func @transform_3(%arg0: i32) -> (i32, i32) {
    %c0_i32 = arith.constant 0 : i32
    %c0_i32_0 = arith.constant 0 : i32
    %c0_i32_1 = arith.constant 0 : i32
    return %c0_i32, %c0_i32_0 : i32, i32
  }
  func.func @transform_4(%arg0: i32) -> (i32, i32) {
    %c0_i32 = arith.constant 0 : i32
    %c0_i32_0 = arith.constant 0 : i32
    %c0_i32_1 = arith.constant 0 : i32
    return %c0_i32, %c0_i32_0 : i32, i32
  }
}

</mosaic_0001>

<bundles_post_ra>
// kernel: diffusion_convolution.1
= control target key start
LH: loop header
LB: loop body
LE: loop exit
PB: predicated region body
PF: predicated region fallthrough
CT: control target
= control target key end

     0   :  { %vm23_vm0 = vcmask 261120   ;;  %s472_s21 = smov 24   ;;  %s473_s27 = smov 8   ;;  %vm246_vm1 = vcmask 64512   ;;  %vm249_vm2 = vcmask 130048   ;;  %vm252_vm3 = vcmask 195584   ;;  %s571_s0 = inlined_call_operand.vmem [shape: f32[16,8], index: 0, kind: input, shape index: {}]   ;;  %s572_s1 = inlined_call_operand.vmem [shape: f32[32,32], index: 1, kind: input, shape index: {}]   ;;  %s573_s2 = inlined_call_operand.vmem [shape: f32[48,16], index: 2, kind: input, shape index: {}]   ;;  %s574_s3 = inlined_call_operand.vmem [shape: f32[1,16], index: 3, kind: input, shape index: {}]   ;;  %s575_s4 = inlined_call_operand.vmem [shape: f32[16,16], index: 4, kind: output, shape index: {}]  }
   0x1   :  { %v505_v0 = vld [vmem:[%s571_s0] sm:$0xff]  ;;  %v510_v1 = vld [vmem:[%s571_s0 + $0x8] sm:$0xff]  ;;  %v19_v5 = vld [vmem:[%s572_s1 + $0x10] sm:$0xff]  ;;  %s474_s28 = smov 32   ;;  %s475_s14 = smov 16   ;;  %vm257_vm4 = vcmask 326656  }
   0x2   :  { %v17_v2 = vld [vmem:[%s572_s1] sm:$0xff]  ;;  %v439_v3 = vpack.c.bf16 %v510_v1, %v505_v0  ;;  %224 = vrot.lane.b32.xlu0 %v505_v0, %s472_s21  ;;  %226 = vrot.lane.b32.xlu1 %v510_v1, %s472_s21  ;;  %v18_v4 = vld [vmem:[%s572_s1 + $0x8] sm:$0xff]  ;;  %s476_s15 = smov 40   ;;  %vm273_vm5 = vcmask 392192  }
   0x3   :  { %404 = vmatprep.mubr.msk.f32.mxu0 %vm23_vm0, %v17_v2  ;;  %418 = vmatprep.mubr.msk.f32.mxu1 %vm23_vm0, %v17_v2  ;;  %v20_v6 = vld [vmem:[%s572_s1 + $0x18] sm:$0xff]  ;;  %v260_v13 = vld [vmem:[%s573_s2] sm:$0xff]  ;;  %v261_v14 = vld [vmem:[%s573_s2 + $0x8] sm:$0xff] }
   0x4   :  { %440 = vmatprep.subr.bf16.mxu0 %v439_v3  ;;  %v455_v15 = vpack.c.bf16 %v261_v14, %v260_v13  ;;  %v262_v16 = vld [vmem:[%s573_s2 + $0x10] sm:$0xff]  ;;  %v263_v17 = vld [vmem:[%s573_s2 + $0x18] sm:$0xff]  ;;  %v264_v19 = vld [vmem:[%s573_s2 + $0x20] sm:$0xff] }
   0x5   :  { %442 = vmatpush3.bf16.msra.mxu0 %v439_v3  ;;  %v459_v18 = vpack.c.bf16 %v263_v17, %v262_v16  ;;  %v265_v20 = vld [vmem:[%s573_s2 + $0x28] sm:$0xff]  ;;  %v369_v46 = vld [vmem:[%s574_s3] ss:$0 sm:$0xff] }
   0x6   :  { %444 = vmatprep.subr.bf16.mxu0 %v439_v3  ;;  %v463_v21 = vpack.c.bf16 %v265_v20, %v264_v19 }
   0x9   :  { %446 = vmatpush3.bf16.msra.mxu0 %v439_v3 }
   0xa   :  { %456 = vmatprep.subr.bf16.mxu0 %v455_v15 }
   0xc   :  { %405 = vmatmul.mubr.msk.f32.vlgmr.msra.gmra.mrb[0].mxu0 %vm23_vm0, %v18_v4 }
   0xd   :  { %407 = vmatprep.mubr.msk.f32.mxu0 %vm23_vm0, %v19_v5  ;;  %458 = vmatpush3.bf16.msra.mxu0 %v455_v15 }
   0xe   :  { %460 = vmatprep.subr.bf16.mxu0 %v459_v18 }
  0x10   :  { %408 = vmatmul.mubr.msk.f32.gmra.mrb[2].mxu0 %vm23_vm0, %v20_v6 }
  0x11   :  { %462 = vmatpush3.bf16.msra.mxu0 %v459_v18 }
  0x12   :  { %464 = vmatprep.subr.bf16.mxu0 %v463_v21 }
  0x15   :  { %466 = vmatpush3.bf16.msra.mxu0 %v463_v21 }
  0x74   :  { %v225_v26 = vpop.permute.xlu0 %224  ;;  %v227_v28 = vpop.permute.xlu1 %226 }
  0xdf   :  { %v406_v7 = vpop.f32.mrb[0].mxu0 }
  0xe0   :  { %210 = vrot.lane.b32.xlu0 %v406_v7, %s473_s27  ;;  %v102_v8 = vpop.f32.mrb[1].mxu0 }
  0xe1   :  { %v447_v9 = vpack.c.bf16 %v406_v7, %v102_v8 }
  0xe3   :  { %v409_v10 = vpop.f32.mrb[2].mxu0  ;;  %448 = vmatprep.subr.bf16.mxu1 %v447_v9 }
  0xe4   :  { %208 = vrot.lane.b32.xlu0 %v102_v8, %s473_s27  ;;  %450 = vmatpush3.bf16.msra.mxu1 %v447_v9  ;;  %v112_v11 = vpop.f32.mrb[3].mxu0 }
  0xe5   :  { %234 = vrot.lane.b32.xlu1 %v409_v10, %s474_s28  ;;  %v451_v12 = vpack.c.bf16 %v409_v10, %v112_v11 }
  0xe7   :  { %452 = vmatprep.subr.bf16.mxu1 %v451_v12 }
  0xe8   :  { %232 = vrot.lane.b32.xlu0 %v112_v11, %s474_s28  ;;  %454 = vmatpush3.bf16.msra.mxu1 %v451_v12 }
  0xeb   :  { %419 = vmatmul.mubr.msk.f32.vlgmr.msra.gmra.mrb[0].mxu1 %vm23_vm0, %v18_v4 }
  0xec   :  { %421 = vmatprep.mubr.msk.f32.mxu1 %vm23_vm0, %v19_v5 }
  0xef   :  { %422 = vmatmul.mubr.msk.f32.gmra.mrb[2].mxu1 %vm23_vm0, %v20_v6 }
 0x152   :  { %v211_v27 = vpop.permute.xlu0 %210 }
 0x153   :  { %v248_v32 = vsel %vm246_vm1, %v510_v1, %v211_v27 }
 0x156   :  { %v209_v29 = vpop.permute.xlu0 %208 }
 0x157   :  { %v235_v30 = vpop.permute.xlu1 %234  ;;  %v247_v35 = vsel %vm246_vm1, %v505_v0, %v209_v29 }
 0x15a   :  { %v233_v33 = vpop.permute.xlu0 %232 }
 0x1be   :  { %v420_v22 = vpop.f32.mrb[0].mxu1 }
 0x1bf   :  { %218 = vrot.lane.b32.xlu1 %v420_v22, %s475_s14  ;;  %v187_v23 = vpop.f32.mrb[1].mxu1 }
 0x1c2   :  { %v423_v24 = vpop.f32.mrb[2].mxu1 }
 0x1c3   :  { %216 = vrot.lane.b32.xlu1 %v187_v23, %s475_s14  ;;  %v197_v25 = vpop.f32.mrb[3].mxu1 }
 0x1c4   :  { %240 = vrot.lane.b32.xlu0 %v197_v25, %s476_s15 }
 0x1c7   :  { %242 = vrot.lane.b32.xlu1 %v423_v24, %s476_s15 }
 0x231   :  { %v219_v31 = vpop.permute.xlu1 %218 }
 0x232   :  { %v251_v34 = vsel %vm249_vm2, %v248_v32, %v219_v31 }
 0x233   :  { %v254_v37 = vsel %vm252_vm3, %v251_v34, %v227_v28 }
 0x234   :  { %v256_v43 = vsel %vm23_vm0, %v254_v37, %v235_v30 }
 0x235   :  { %v217_v36 = vpop.permute.xlu1 %216 }
 0x236   :  { %v250_v38 = vsel %vm249_vm2, %v247_v35, %v217_v36  ;;  %v241_v39 = vpop.permute.xlu0 %240 }
 0x237   :  { %v253_v40 = vsel %vm252_vm3, %v250_v38, %v225_v26 }
 0x238   :  { %v255_v41 = vsel %vm23_vm0, %v253_v40, %v233_v33 }
 0x239   :  { %v258_v42 = vsel %vm257_vm4, %v255_v41, %v241_v39  ;;  %v243_v44 = vpop.permute.xlu1 %242 }
 0x23a   :  { %v259_v45 = vsel %vm257_vm4, %v256_v43, %v243_v44  ;;  %436 = vmatprep.mubr.msk.f32.mxu0 %vm273_vm5, %v258_v42 }
 0x23b   :  { %437 = vmatmul.mubr.msk.f32.vlgmr.msra.gmra.mrb[4].mxu0 %vm273_vm5, %v259_v45 }
 0x30e   :  { %v438_v47 = vpop.f32.mrb[4].mxu0 }
 0x30f   :  { %v352_v48 = vadd.f32 %v438_v47, %v369_v46  ;;  %v346_v49 = vpop.f32.mrb[5].mxu0 }
 0x310   :  { %v347_v50 = vadd.f32 %v369_v46, %v346_v49 }
 0x311   :  { %356 = vst.msk [vmem:[%s575_s4 + $0x8] sm:$0xff] %vm249_vm2, %v352_v48 }
 0x312   :  { %355 = vst.msk [vmem:[%s575_s4] sm:$0xff] %vm249_vm2, %v347_v50 }

</bundles_post_ra>
